<compile_context>
chip_gen: v7x
topology: tpu7x:2x2x1
jax: 0.10.0
libtpu: 0.0.40
codegen_flags: <defaults>
</compile_context>

<pallas_src>
import functools

import jax
import jax.numpy as jnp
from jax.experimental import pallas as pl
from jax.experimental.pallas import tpu as pltpu


# ---------------------------------------------------------------------------
# Generation-aware VMEM budgeting.
# ---------------------------------------------------------------------------
def _vmem_plan():
    """Returns (per_input_block_budget_bytes, vmem_limit_bytes)."""
    vmem_cap = None
    try:
        info = pltpu.get_tpu_info()
        for attr in ("vmem_capacity_bytes", "vmem_bytes", "vmem_size_bytes"):
            v = getattr(info, attr, None)
            if v:
                vmem_cap = int(v)
                break
    except Exception:
        vmem_cap = None
    if vmem_cap is None:
        # Unknown chip: assume the smallest per-TC VMEM (v7x, 64 MiB).
        vmem_cap = 64 * 1024 * 1024
    if vmem_cap <= 64 * 1024 * 1024:
        # v7x: 2 inputs x 2 pipeline buffers x 6 MiB = 24 MiB of input
        # buffering + tiny (8, W) acc scratch, comfortably under a 48 MiB cap.
        return 6 * 1024 * 1024, 48 * 1024 * 1024
    # v5e / v6e (128 MiB physical): 4 x 8 MiB = 32 MiB under a 64 MiB cap.
    return 8 * 1024 * 1024, 64 * 1024 * 1024


def _pick_tile_h(C, H, W, itemsize, budget_bytes):
    """Largest step-aligned tile height whose input block fits the budget."""
    step = 16 if int(itemsize) < 4 else 8      # bf16 packs 2 rows per sublane
    if H < step:
        return H                               # full-extent block (tiny images)
    w_pad = pl.cdiv(W, 128) * 128              # lane padding in VMEM
    per_row = C * w_pad * max(int(itemsize), 1)
    rows = max(step, (budget_bytes // per_row) // step * step)
    h_ceil = pl.cdiv(H, step) * step
    return int(min(rows, h_ceil))


# ---------------------------------------------------------------------------
# In-kernel helpers.
# ---------------------------------------------------------------------------
def _fold_rows(x, acc_rows):
    """Fold (TH, W) sublane slabs into an (acc_rows, W) slab (pure VPU adds)."""
    th, w = x.shape
    if th == acc_rows:
        return x
    return x.reshape(th // acc_rows, acc_rows, w).sum(axis=0)


def _row_mask(shape, c, h, *, inner, tile_h, H):
    """True for rows of this tile that are inside the image height."""
    row0 = (c * inner + h) * tile_h
    rows = jax.lax.broadcasted_iota(jnp.int32, shape, 0)
    return rows < (H - row0)


# ---------------------------------------------------------------------------
# Kernel 1: per-(image, chunk) partial sums over (H, W) of
#   1 - cosine_similarity(pred, target)  (similarity over channel axis).
# ---------------------------------------------------------------------------
def _cos_kernel(p_ref, t_ref, o_ref, acc_ref, *, eps, inner, tile_h, H,
                need_mask):
    c = pl.program_id(1)
    h = pl.program_id(2)

    p = p_ref[0].astype(jnp.float32)          # (C, TILE_H, W)
    t = t_ref[0].astype(jnp.float32)

    dot = jnp.sum(p * t, axis=0)              # (TILE_H, W) -- VPU adds over C
    nrm_p = jnp.sum(p * p, axis=0)
    nrm_t = jnp.sum(t * t, axis=0)

    # torch.nn.CosineSimilarity: x1.x2 / max(||x1||*||x2||, eps).  The divide
    # is moved onto the EUP slot via an approximate reciprocal.
    denom = jnp.maximum(jnp.sqrt(nrm_p * nrm_t), eps)
    val = 1.0 - dot * pl.reciprocal(denom, approx=True)

    if need_mask:                             # zero rows beyond the image
        mask = _row_mask(val.shape, c, h, inner=inner, tile_h=tile_h, H=H)
        val = jnp.where(mask, val, 0.0)

    @pl.when(h == 0)
    def _():
        acc_ref[...] = jnp.zeros_like(acc_ref)

    acc_ref[...] += _fold_rows(val, acc_ref.shape[0])

    @pl.when(h == inner - 1)
    def _():
        o_ref[...] = jnp.full((1, 1, 1, 1), jnp.sum(acc_ref[...]), o_ref.dtype)


# ---------------------------------------------------------------------------
# Kernel 2: per-(image, chunk) partial sums of
#   clamp( base(p - t) + loss_lambda * cosine_term, clip_min, clip_max )
# where base = |.| for 'l1' or sqrt(.^2 + 1e-12) for 'huber', and
# cosine_term = cos_sum / (N*H*W) is folded into `lambda_over_count`.
# ---------------------------------------------------------------------------
def _huber_kernel(cos_ref, p_ref, t_ref, o_ref, acc_ref, *, lambda_over_count,
                  clip_min, clip_max, criterion, inner, tile_h, H, need_mask):
    c = pl.program_id(1)
    h = pl.program_id(2)

    p = p_ref[0].astype(jnp.float32)          # (C, TILE_H, W)
    t = t_ref[0].astype(jnp.float32)
    cos_bias = cos_ref[0, 0] * lambda_over_count   # scalar from SMEM

    diff = p - t
    if criterion == "l1":
        base = jnp.abs(diff)
    else:  # 'huber'
        base = jnp.sqrt(diff * diff + 1e-12)

    val = jnp.clip(base + cos_bias, clip_min, clip_max)   # (C, TILE_H, W)
    partial = jnp.sum(val, axis=0)                        # (TILE_H, W)

    if need_mask:
        mask = _row_mask(partial.shape, c, h, inner=inner, tile_h=tile_h, H=H)
        partial = jnp.where(mask, partial, 0.0)

    @pl.when(h == 0)
    def _():
        acc_ref[...] = jnp.zeros_like(acc_ref)

    acc_ref[...] += _fold_rows(partial, acc_ref.shape[0])

    @pl.when(h == inner - 1)
    def _():
        o_ref[...] = jnp.full((1, 1, 1, 1), jnp.sum(acc_ref[...]), o_ref.dtype)


# ---------------------------------------------------------------------------
# Wrapper matching chc.forward semantics ('mean' reduction, as in the module).
# ---------------------------------------------------------------------------
def chc_loss(pred, target, *,
             loss_weight=1.0,
             criterion="huber",
             loss_lambda=0.019607,
             clip_min=0.003921,
             clip_max=0.996078,
             eps=1e-20,
             tile_h=None):
    assert pred.shape == target.shape and pred.ndim == 4
    if criterion not in ("l1", "huber"):
        raise NotImplementedError(f"{criterion} not implemented.")
    N, C, H, W = pred.shape

    block_budget, vmem_limit = _vmem_plan()
    if tile_h is None:
        tile_h = _pick_tile_h(C, H, W, jnp.dtype(pred.dtype).itemsize,
                              block_budget)
    assert tile_h == H or tile_h % 8 == 0, "tile_h must be a multiple of 8"

    grid_h = pl.cdiv(H, tile_h)
    # Second parallel axis so both v7x TensorCores stay busy at small N.
    n_chunks = 2 if grid_h >= 2 else 1
    inner = pl.cdiv(grid_h, n_chunks)
    # Mask is needed when the padded step count overshoots the image height
    # (non-divisible H and/or dummy tail steps from the chunk split).
    need_mask = (n_chunks * inner * tile_h) != H

    acc_rows = 8 if (tile_h % 8 == 0) else tile_h

    def in_idx(n, c, h):
        hb = c * inner + h
        hb = jnp.minimum(hb, grid_h - 1)   # dummy tail steps re-read a valid block
        return (n, 0, hb, 0)

    in_spec = pl.BlockSpec((1, C, tile_h, W), in_idx)
    out_spec = pl.BlockSpec((1, 1, 1, 1), lambda n, c, h: (n, c, 0, 0))
    grid = (N, n_chunks, inner)
    scratch = [pltpu.VMEM((acc_rows, W), jnp.float32)]
    cparams = pltpu.CompilerParams(
        dimension_semantics=("parallel", "parallel", "arbitrary"),
        vmem_limit_bytes=vmem_limit,
    )
    common = dict(inner=inner, tile_h=tile_h, H=H, need_mask=need_mask)

    # Pass 1: per-(image, chunk) partial sums of (1 - cos_sim over channels).
    cos_parts = pl.pallas_call(
        functools.partial(_cos_kernel, eps=float(eps), **common),
        out_shape=jax.ShapeDtypeStruct((N, n_chunks, 1, 1), jnp.float32),
        grid=grid,
        in_specs=[in_spec, in_spec],
        out_specs=out_spec,
        scratch_shapes=scratch,
        compiler_params=cparams,
    )(pred, target)

    cos_sum = jnp.sum(cos_parts).reshape(1, 1).astype(jnp.float32)

    # Pass 2: per-(image, chunk) partial sums of the clipped huber / l1 term.
    huber_parts = pl.pallas_call(
        functools.partial(
            _huber_kernel,
            lambda_over_count=float(loss_lambda) / float(N * H * W),
            clip_min=float(clip_min),
            clip_max=float(clip_max),
            criterion=criterion,
            **common),
        out_shape=jax.ShapeDtypeStruct((N, n_chunks, 1, 1), jnp.float32),
        grid=grid,
        in_specs=[
            pl.BlockSpec(memory_space=pltpu.MemorySpace.SMEM),  # (1,1) cos sum
            in_spec,
            in_spec,
        ],
        out_specs=out_spec,
        scratch_shapes=scratch,
        compiler_params=cparams,
    )(cos_sum, pred, target)

    loss = jnp.sum(huber_parts) / jnp.float32(N * C * H * W)
    return jnp.float32(loss_weight) * loss


# Pure-JAX reference (mirrors the PyTorch forward) for correctness checking.
def chc_ref(pred, target, *,
            loss_weight=1.0, criterion="huber", loss_lambda=0.019607,
            clip_min=0.003921, clip_max=0.996078, eps=1e-20):
    dot = jnp.sum(pred * target, axis=1)
    denom = jnp.maximum(
        jnp.sqrt(jnp.sum(pred * pred, axis=1))
        * jnp.sqrt(jnp.sum(target * target, axis=1)),
        eps,
    )
    cosine_term = jnp.mean(1.0 - dot / denom)
    diff = pred - target
    base = jnp.abs(diff) if criterion == "l1" else jnp.sqrt(diff * diff + 1e-12)
    loss = jnp.mean(jnp.clip(base + loss_lambda * cosine_term,
                             clip_min, clip_max))
    return loss_weight * loss


if __name__ == "__main__":
    key = jax.random.PRNGKey(0)
    k1, k2, k3, k4 = jax.random.split(key, 4)

    # Small NCHW shapes consistent with the module's (N, C, H, W) inputs.
    N, C, H, W = 2, 4, 16, 16
    pred = jax.random.uniform(k1, (N, C, H, W), dtype=jnp.float32)
    target = jax.random.uniform(k2, (N, C, H, W), dtype=jnp.float32)

    # Tolerance loosened vs the exact reference because the cosine term uses
    # the EUP approximate reciprocal (~2^-12 relative precision).
    ref = chc_ref(pred, target)
    out_tiled = jax.block_until_ready(chc_loss(pred, target, tile_h=8))
    assert jnp.allclose(out_tiled, ref, rtol=1e-4, atol=1e-5), (out_tiled, ref)

    out_auto = jax.block_until_ready(chc_loss(pred, target))
    assert jnp.allclose(out_auto, ref, rtol=1e-4, atol=1e-5), (out_auto, ref)

    # Non-divisible height: exercises the partial-block + row-mask path.
    H2 = 24
    pred2 = jax.random.uniform(k3, (1, 3, H2, W), dtype=jnp.float32)
    target2 = jax.random.uniform(k4, (1, 3, H2, W), dtype=jnp.float32)
    ref2 = chc_ref(pred2, target2)
    out2 = jax.block_until_ready(chc_loss(pred2, target2, tile_h=16))
    assert jnp.allclose(out2, ref2, rtol=1e-4, atol=1e-5), (out2, ref2)

    # l1 criterion path.
    ref_l1 = chc_ref(pred, target, criterion="l1")
    out_l1 = jax.block_until_ready(chc_loss(pred, target, criterion="l1"))
    assert jnp.allclose(out_l1, ref_l1, rtol=1e-4, atol=1e-5), (out_l1, ref_l1)

    print("KERNEL_OK")
</pallas_src>

<mosaic_0001>
module attributes {stable_mosaic.version = 11 : i64} {
  func.func @_cos_kernel(%arg0: i32, %arg1: i32, %arg2: i32, %arg3: memref<1x4x8x16xf32, #tpu.memory_space<vmem>>, %arg4: memref<1x4x8x16xf32, #tpu.memory_space<vmem>>, %arg5: memref<1x1x1x1xf32, #tpu.memory_space<vmem>>, %arg6: memref<8x16xf32, #tpu.memory_space<vmem>>) attributes {dimension_semantics = [#tpu.dimension_semantics<parallel>, #tpu.dimension_semantics<parallel>, #tpu.dimension_semantics<arbitrary>], iteration_bounds = array<i64: 2, 2, 1>, scalar_prefetch = 0 : i64, scratch_operands = 1 : i64, tpu.core_type = #tpu.core_type<tc>, window_params = [{transform_indices = @transform_0, window_bounds = array<i64: 1, 4, 8, 16>}, {transform_indices = @transform_1, window_bounds = array<i64: 1, 4, 8, 16>}, {transform_indices = @transform_2, window_bounds = array<i64: 1, 1, 1, 1>}]} {
    %c0 = arith.constant 0 : index
    %c0_0 = arith.constant 0 : index
    %c0_1 = arith.constant 0 : index
    %c0_2 = arith.constant 0 : index
    %0 = vector.load %arg3[%c0, %c0_0, %c0_1, %c0_2] : memref<1x4x8x16xf32, #tpu.memory_space<vmem>>, vector<1x4x8x16xf32>
    %1 = vector.shape_cast %0 : vector<1x4x8x16xf32> to vector<4x8x16xf32>
    %c0_3 = arith.constant 0 : index
    %c0_4 = arith.constant 0 : index
    %c0_5 = arith.constant 0 : index
    %c0_6 = arith.constant 0 : index
    %2 = vector.load %arg4[%c0_3, %c0_4, %c0_5, %c0_6] : memref<1x4x8x16xf32, #tpu.memory_space<vmem>>, vector<1x4x8x16xf32>
    %3 = vector.shape_cast %2 : vector<1x4x8x16xf32> to vector<4x8x16xf32>
    %4 = arith.mulf %1, %3 : vector<4x8x16xf32>
    %cst = arith.constant dense<0.000000e+00> : vector<8x16xf32>
    %5 = vector.multi_reduction <add>, %4, %cst [0] : vector<4x8x16xf32> to vector<8x16xf32>
    %6 = arith.mulf %1, %1 : vector<4x8x16xf32>
    %cst_7 = arith.constant dense<0.000000e+00> : vector<8x16xf32>
    %7 = vector.multi_reduction <add>, %6, %cst_7 [0] : vector<4x8x16xf32> to vector<8x16xf32>
    %8 = arith.mulf %3, %3 : vector<4x8x16xf32>
    %cst_8 = arith.constant dense<0.000000e+00> : vector<8x16xf32>
    %9 = vector.multi_reduction <add>, %8, %cst_8 [0] : vector<4x8x16xf32> to vector<8x16xf32>
    %10 = arith.mulf %7, %9 : vector<8x16xf32>
    %11 = math.sqrt %10 : vector<8x16xf32>
    %cst_9 = arith.constant 9.99999968E-21 : f32
    %12 = vector.broadcast %cst_9 : f32 to vector<8x16xf32>
    %13 = arith.maximumf %11, %12 : vector<8x16xf32>
    %14 = tpu.reciprocal %13 {approx = true} : vector<8x16xf32> -> vector<8x16xf32>
    %15 = arith.mulf %5, %14 : vector<8x16xf32>
    %cst_10 = arith.constant 1.000000e+00 : f32
    %16 = vector.broadcast %cst_10 : f32 to vector<8x16xf32>
    %17 = arith.subf %16, %15 : vector<8x16xf32>
    %c0_i32 = arith.constant 0 : i32
    %18 = arith.cmpi eq, %arg2, %c0_i32 : i32
    %19 = arith.extui %18 : i1 to i32
    %c0_i32_11 = arith.constant 0 : i32
    %20 = arith.cmpi ne, %19, %c0_i32_11 : i32
    scf.if %20 {
      %cst_18 = arith.constant 0.000000e+00 : f32
      %27 = vector.broadcast %cst_18 : f32 to vector<8x16xf32>
      %c0_19 = arith.constant 0 : index
      %c0_20 = arith.constant 0 : index
      %28 = vector.load %arg6[%c0_19, %c0_20] : memref<8x16xf32, #tpu.memory_space<vmem>>, vector<8x16xf32>
      tpu.vector_store %arg6[%c0_19, %c0_20], %27 {strides = array<i32>} : memref<8x16xf32, #tpu.memory_space<vmem>>, vector<8x16xf32>,
    } else {
    }
    %c0_12 = arith.constant 0 : index
    %c0_13 = arith.constant 0 : index
    %21 = vector.load %arg6[%c0_12, %c0_13] : memref<8x16xf32, #tpu.memory_space<vmem>>, vector<8x16xf32>
    %22 = arith.addf %21, %17 : vector<8x16xf32>
    %c0_14 = arith.constant 0 : index
    %c0_15 = arith.constant 0 : index
    %23 = vector.load %arg6[%c0_14, %c0_15] : memref<8x16xf32, #tpu.memory_space<vmem>>, vector<8x16xf32>
    tpu.vector_store %arg6[%c0_14, %c0_15], %22 {strides = array<i32>} : memref<8x16xf32, #tpu.memory_space<vmem>>, vector<8x16xf32>,
    %c0_i32_16 = arith.constant 0 : i32
    %24 = arith.cmpi eq, %arg2, %c0_i32_16 : i32
    %25 = arith.extui %24 : i1 to i32
    %c0_i32_17 = arith.constant 0 : i32
    %26 = arith.cmpi ne, %25, %c0_i32_17 : i32
    scf.if %26 {
      %c0_18 = arith.constant 0 : index
      %c0_19 = arith.constant 0 : index
      %27 = vector.load %arg6[%c0_18, %c0_19] : memref<8x16xf32, #tpu.memory_space<vmem>>, vector<8x16xf32>
      %28 = vector.shape_cast %27 : vector<8x16xf32> to vector<1x8x16xf32>
      %cst_20 = arith.constant dense<0.000000e+00> : vector<1xf32>
      %29 = vector.multi_reduction <add>, %28, %cst_20 [1, 2] : vector<1x8x16xf32> to vector<1xf32>
      %30 = vector.shape_cast %29 : vector<1xf32> to vector<1x1x1xf32>
      %31 = vector.extract %30[0, 0, 0] : f32 from vector<1x1x1xf32>
      %32 = vector.broadcast %31 : f32 to vector<1x1x1x1xf32>
      %c0_21 = arith.constant 0 : index
      %c0_22 = arith.constant 0 : index
      %c0_23 = arith.constant 0 : index
      %c0_24 = arith.constant 0 : index
      %33 = vector.load %arg5[%c0_21, %c0_22, %c0_23, %c0_24] : memref<1x1x1x1xf32, #tpu.memory_space<vmem>>, vector<1x1x1x1xf32>
      tpu.vector_store %arg5[%c0_21, %c0_22, %c0_23, %c0_24], %32 {strides = array<i32>} : memref<1x1x1x1xf32, #tpu.memory_space<vmem>>, vector<1x1x1x1xf32>,
    } else {
    }
    return
  }
  func.func @transform_0(%arg0: i32, %arg1: i32, %arg2: i32) -> (i32, i32, i32, i32) {
    %c1_i32 = arith.constant 1 : i32
    %0 = arith.muli %arg1, %c1_i32 : i32
    %1 = arith.addi %0, %arg2 : i32
    %c1_i32_0 = arith.constant 1 : i32
    %2 = arith.minsi %1, %c1_i32_0 : i32
    %c0_i32 = arith.constant 0 : i32
    %c0_i32_1 = arith.constant 0 : i32
    %c0_i32_2 = arith.constant 0 : i32
    return %arg0, %c0_i32, %2, %c0_i32_1 : i32, i32, i32, i32
  }
  func.func @transform_1(%arg0: i32, %arg1: i32, %arg2: i32) -> (i32, i32, i32, i32) {
    %c1_i32 = arith.constant 1 : i32
    %0 = arith.muli %arg1, %c1_i32 : i32
    %1 = arith.addi %0, %arg2 : i32
    %c1_i32_0 = arith.constant 1 : i32
    %2 = arith.minsi %1, %c1_i32_0 : i32
    %c0_i32 = arith.constant 0 : i32
    %c0_i32_1 = arith.constant 0 : i32
    %c0_i32_2 = arith.constant 0 : i32
    return %arg0, %c0_i32, %2, %c0_i32_1 : i32, i32, i32, i32
  }
  func.func @transform_2(%arg0: i32, %arg1: i32, %arg2: i32) -> (i32, i32, i32, i32) {
    %c0_i32 = arith.constant 0 : i32
    %c0_i32_0 = arith.constant 0 : i32
    %c0_i32_1 = arith.constant 0 : i32
    return %arg0, %arg1, %c0_i32, %c0_i32_0 : i32, i32, i32, i32
  }
}

</mosaic_0001>

<bundles_post_ra>
// kernel: tpu_custom_call.1
= control target key start
LH: loop header
LB: loop body
LE: loop exit
PB: predicated region body
PF: predicated region fallthrough
CT: control target
= control target key end

     0   :  { %7 = vsyncpa [#allocation4], 0  ;;  %s942_s0 = inlined_call_operand.hbm [shape: f32[2,4,16,16], index: 0, kind: input, shape index: {}]   ;;  %s943_s1 = inlined_call_operand.hbm [shape: f32[2,4,16,16], index: 1, kind: input, shape index: {}]   ;;  %s944_s2 = inlined_call_operand.vmem [shape: f32[2,2,1,1], index: 2, kind: output, shape index: {}]  }
   0x1   :  { %9 = vsyncpa [#allocation4 + $0x1], 0 }
   0x2   :  { %10 = vsyncpa [#allocation6], 0 }
   0x3   :  { %12 = vsyncpa [#allocation6 + $0x1], 0  ;;  %s709_s9 = smov 0   ;;  %s711_s10 = smov 0  }
   0x4   :  { %s713_s11 = smov 0   ;;  %s715_s12 = smov 0  }
   0x5   :  { %s717_s13 = smov 0   ;;  %s719_s14 = smov 0  }
   0x6   :  { %s721_s15 = smov 0   ;;  %s723_s16 = smov 0  }
   0x7 LB: > { %s454_s17 = sadd.s32 4294967295, %s686_s16   ;;  %s33_s18 = sadd.s32 1, %s678_s14  ;;  %s686_s16 = sphi %s723_s16, %s18_s16   ;;  %s682_s15 = sphi %s721_s15, %s958_s15   ;;  %s678_s14 = sphi %s719_s14, %s957_s14   ;;  %s674_s13 = sphi %s717_s13, %s956_s13   ;;  %s670_s12 = sphi %s715_s12, %s955_s12   ;;  %s666_s11 = sphi %s713_s11, %s954_s11   ;;  %s662_s10 = sphi %s711_s10, %s953_s10   ;;  %s658_s9 = sphi %s709_s9, %s952_s9  }
   0x8   : > { %p35_p0 = scmp.ge.s32.totalorder %s33_s18, 2  ;;  %s37_s19 = sadd.s32 1, %s682_s15 }
   0x9   : > { %p42_p1 = scmp.lt.s32.totalorder %s678_s14, 1  ;;  %s52_s20 = sadd.s32 1, %s666_s11 }
   0xa   : > { %s960_s18 = smov (%p35_p0, %s33_s18), 0  ;;  %s962_s19 = smov (!%p35_p0, %s37_s19), %s682_s15 }
   0xb   : > { %s43_s21 = scalar_select %p42_p1, %s678_s14, 1 }
   0xc   : > { %p39_p2 = scmp.ge.s32.totalorder %s962_s19, 2  ;;  %p45_p3 = scmp.lt.s32.totalorder %s960_s18, 1 }
   0xd   : > { %p59_p4 = scmp.ne.s32.totalorder %s666_s11, %s662_s10  ;;  %p60_p5 = scmp.eq.s32.totalorder %s686_s16, 0 }
   0xe   : > { %s964_s19 = smov (%p39_p2, %s962_s19), 0  ;;  %p65_p7 = scmp.ne.s32.totalorder %s662_s10, %s658_s9 }
   0xf   : > { %s46_s22 = scalar_select %p45_p3, %s960_s18, 1 }
  0x10   : > { %s47_s23 = ssub.s32 %s682_s15, %s964_s19  ;;  %p767_p6 = por %p60_p5, %p59_p4 }
  0x11   : > { %s48_s25 = ssub.s32 %s43_s21, %s46_s22  ;;  %p66_p8 = scmp.eq.s32.totalorder %s454_s17, 0 }
  0x12   : > { %s49_s26 = sor.u32 %s48_s25, %s47_s23  ;;  %p483_p11 = scmp.lt.s32.totalorder %s686_s16, 4 }
  0x13   : > { %p50_p9 = scmp.eq.s32.totalorder %s49_s26, 0  ;;  %p773_p10 = por %p66_p8, %p65_p7 }
  0x14   : > { %s782_s29 = sand.u32 1, %s666_s11   ;;  %s459_s30 = sshll.u32 %s682_s15, 3 }
  0x15   : > { %s947_s27 = scalar_select %p773_p10, 1, 0 }
  0x16   : > { %s779_s28 = scalar_select %p50_p9, %s666_s11, %s52_s20  }
  0x17   : > { %s458_s3 = sshll.u32 %s782_s29, 5  ;;  %s786_s4 = sadd.s32 %s459_s30, %s43_s21 }
  0x18   : > { %s460_s5 = sshll.u32 %s786_s4, 7  ;;  %s155_s6 = scalar_lea.vmem [#allocation3], %s458_s3 }
  0x19   : > { %s166_s7 = sshll.u32 %s155_s6, 4  ;;  %s796_s17 = scalar_lea.hbm %s942_s0, %s460_s5  ;;  %s798_s7 = int_to_ptr.vmem [resolvable:$true] %s166_s7 }
  0x1a   : > { %p802_p12 = pnand %p483_p11, %p767_p6  ;;  %s152_s21 = scalar_lea.sflag [#allocation4], %s782_s29 }
  0x1b   : > { %s556_s22 = scalar_lea.hbm %s796_s17, 512  ;;  %s561_s24 = scalar_lea.hbm %s942_s0, 2048 }
  0x1c   : > { %p557_p0 = scmp.ne.s32.totalorder %s796_s17, %s556_s22  ;;  %p558_p1 = pneg %p802_p12 }
  0x1d   : > { %p562_p4 = scmp.lt.u32.totalorder %s796_s17, %s942_s0  ;;  %p563_p5 = scmp.lt.u32.totalorder %s561_s24, %s556_s22 }
  0x1e   : > { %p559_p2 = pnand %p558_p1, %p557_p0  ;;  %p565_p7 = scmp.lt.u32.totalorder %s556_s22, %s796_s17 }
  0x1f   : > { %p564_p6 = por %p563_p5, %p562_p4 }
  0x20   : > { %p560_p3 = pneg %p559_p2 }
  0x21   : > { %p566_p8 = por %p565_p7, %p564_p6 }
  0x23   : > { %p567_p9 = pnand %p566_p8, %p560_p3 }
  0x25   : > { %570 = shalt.err (!%p567_p9)
}
  0x26   : > { %s571_s6 = scalar_lea.vmem %s798_s7, 512  ;;  %s688_s8 = smov [#allocation3]  }
  0x27   : > { %p572_p11 = scmp.ne.s32.totalorder %s798_s7, %s571_s6  ;;  %s576_s9 = sshll.u32 %s688_s8, 4  ;;  %s577_s9 = int_to_ptr.vmem [resolvable:$false] %s576_s9 }
  0x28   : > { %s578_s23 = scalar_lea.vmem %s577_s9, 1024  ;;  %p579_p13 = scmp.lt.s32.totalorder %s798_s7, %s577_s9 }
  0x29   : > { %p574_p0 = pnand %p572_p11, %p558_p1  ;;  %p580_p4 = scmp.lt.s32.totalorder %s578_s23, %s571_s6 }
  0x2b   : > { %p575_p2 = pneg %p574_p0  ;;  %p581_p5 = por %p580_p4, %p579_p13 }
  0x2d   : > { %p582_p6 = pnand %p581_p5, %p575_p2 }
  0x2f   : > { %585 = shalt.err (!%p582_p6)
}
  0x30   : > { %s689_s22 = smov 256   ;;  %s690_s25 = smov 128  }
  0x31   : > { %s691_s24 = smov 8   ;;  %p199_p13 = scmp.lt.s32.totalorder %s686_s16, 5 }
  0x32   : > { %479 = dma.hbm_to_vmem [thread:$0]  (!%p802_p12), %s796_s17, 512, %s798_s7, %s152_s21, %s689_s22, %s690_s25, %s691_s24  }
  0x33   : > { %s844_s6 = scalar_lea.hbm %s943_s1, %s460_s5  ;;  %p949_p3 = scmp.ge.s32.totalorder %s686_s16, 1 }
  0x34   : > { %s180_s9 = scalar_lea.vmem [#allocation5], %s458_s3  ;;  %s177_s4 = scalar_lea.sflag [#allocation6], %s782_s29 }
  0x35   : > { %p848_p7 = pnand %p949_p3, %p199_p13  ;;  %s191_s23 = sshll.u32 %s180_s9, 4  ;;  %s854_s23 = int_to_ptr.vmem [resolvable:$true] %s191_s23 }
  0x36   : > { %s586_s7 = scalar_lea.hbm %s844_s6, 512  ;;  %s591_s21 = scalar_lea.hbm %s943_s1, 2048 }
  0x37   : > { %p587_p8 = scmp.ne.s32.totalorder %s844_s6, %s586_s7  ;;  %p592_p0 = scmp.lt.u32.totalorder %s844_s6, %s943_s1 }
  0x38   : > { %p593_p2 = scmp.lt.u32.totalorder %s591_s21, %s586_s7  ;;  %p595_p5 = scmp.lt.u32.totalorder %s586_s7, %s844_s6 }
  0x39   : > { %p589_p9 = pnand %p587_p8, %p558_p1 }
  0x3a   : > { %p594_p4 = por %p593_p2, %p592_p0 }
  0x3b   : > { %p590_p11 = pneg %p589_p9 }
  0x3c   : > { %p596_p6 = por %p595_p5, %p594_p4 }
  0x3e   : > { %p597_p13 = pnand %p596_p6, %p590_p11 }
  0x40   : > { %600 = shalt.err (!%p597_p13)
}
  0x41   : > { %s601_s3 = scalar_lea.vmem %s854_s23, 512  ;;  %s692_s9 = smov [#allocation5]  }
  0x42   : > { %p602_p3 = scmp.ne.s32.totalorder %s854_s23, %s601_s3  ;;  %s606_s5 = sshll.u32 %s692_s9, 4  ;;  %s607_s5 = int_to_ptr.vmem [resolvable:$false] %s606_s5 }
  0x43   : > { %s608_s17 = scalar_lea.vmem %s607_s5, 1024  ;;  %p609_p10 = scmp.lt.s32.totalorder %s854_s23, %s607_s5 }
  0x44   : > { %p604_p8 = pnand %p602_p3, %p558_p1  ;;  %p610_p0 = scmp.lt.s32.totalorder %s608_s17, %s601_s3 }
  0x46   : > { %p605_p9 = pneg %p604_p8  ;;  %p611_p2 = por %p610_p0, %p609_p10 }
  0x48   : > { %p612_p4 = pnand %p611_p2, %p605_p9 }
  0x4a   : > { %615 = shalt.err (!%p612_p4)
}
  0x4b   : > { %482 = dma.hbm_to_vmem [thread:$0]  (!%p802_p12), %s844_s6, 512, %s854_s23, %s177_s4, %s689_s22, %s690_s25, %s691_s24  }
  0x4c   : > { %203 = sbr.rel (%p848_p7) target bundleno = 349 (0x15d), region = 28  ;;  %s205_s7 = sand.u32 (!%p848_p7), 1, %s662_s10  }
  0x4d   : > { %s465_s21 = sshll.u32 (!%p848_p7), %s205_s7, 5  ;;  %s206_s26 = scalar_lea.sflag (!%p848_p7), [#allocation4], %s205_s7 }
  0x4e   : > { %s209_s30 = scalar_lea.vmem (!%p848_p7), [#allocation3], %s465_s21  ;;  %p951_p10 = scmp.ne.s32.totalorder (!%p848_p7), %s947_s27, 0 }
  0x53   : > { %649 = dma.done.wait (%p951_p10), %s206_s26, 512  }
  0x54   : > { %651 = vsyncadd (%p951_p10), %s206_s26, 4294966784  ;;  %s215_s20 = scalar_lea.sflag [#allocation6], %s205_s7  ;;  %s218_s29 = scalar_lea.vmem [#allocation5], %s465_s21 }
  0x55   : > { %653 = dma.done.wait (%p951_p10), %s215_s20, 512  }
  0x56   : > { %655 = vsyncadd (%p951_p10), %s215_s20, 4294966784  ;;  %vm271_vm0 = vcmask 130048   ;;  %v693_v0 = vmov 0.0   ;;  %v259_v1 = vld [vmem:[%s209_s30] sm:$0xff]  ;;  %v260_v2 = vld [vmem:[%s209_s30 + $0x8] sm:$0xff]  ;;  %p252_p12 = scmp.lt.s32.totalorder %s674_s13, 1 }
  0x57   : > { %317 = vst.msk [vmem:[#allocation2] sm:$0xff] %vm271_vm0, %v693_v0  ;;  %v261_v3 = vld [vmem:[%s209_s30 + $0x10] sm:$0xff]  ;;  %v262_v4 = vld [vmem:[%s209_s30 + $0x18] sm:$0xff]  ;;  %v263_v5 = vld [vmem:[%s218_s29] sm:$0xff]  ;;  %v279_v6 = vmul.f32 %v259_v1, %v259_v1  ;;  %v280_v7 = vmul.f32 %v260_v2, %v260_v2  ;;  %p254_p1 = scmp.lt.s32.totalorder %s670_s12, 1  ;;  %vm336_vm3 = vcmask 0  }
  0x58   : > { %v281_v8 = vmul.f32 %v261_v3, %v261_v3  ;;  %v264_v9 = vld [vmem:[%s218_s29 + $0x8] sm:$0xff]  ;;  %v265_v10 = vld [vmem:[%s218_s29 + $0x10] sm:$0xff]  ;;  %v266_v11 = vld [vmem:[%s218_s29 + $0x18] sm:$0xff]  ;;  %v290_v14 = vmul.f32 %v263_v5, %v263_v5  ;;  %v282_v15 = vmul.f32 %v262_v4, %v262_v4  ;;  %v267_v32 = vmul.f32 %v263_v5, %v259_v1  ;;  %s966_s13 = smov (!%p252_p12, %s674_s13), 1 }
  0x59   : > { %v283_v12 = vsel %vm271_vm0, %v279_v6, 0.0  ;;  %v284_v13 = vsel %vm271_vm0, %v280_v7, 0.0  ;;  %v291_v18 = vmul.f32 %v264_v9, %v264_v9  ;;  %v292_v19 = vmul.f32 %v265_v10, %v265_v10  ;;  %s968_s12 = smov (!%p254_p1, %s670_s12), 1  ;;  %s467_s27 = sshll.u32 %s966_s13, 1 }
  0x5a   : > { %v285_v16 = vadd.f32 %v284_v13, %v283_v12  ;;  %v286_v17 = vsel %vm271_vm0, %v281_v8, 0.0  ;;  %v293_v20 = vmul.f32 %v266_v11, %v266_v11  ;;  %v294_v22 = vsel %vm271_vm0, %v290_v14, 0.0  ;;  %s257_s22 = sadd.s32 %s467_s27, %s968_s12 }
  0x5b   : > { %v288_v23 = vsel %vm271_vm0, %v282_v15, 0.0  ;;  %v295_v24 = vsel %vm271_vm0, %v291_v18, 0.0  ;;  %v297_v25 = vsel %vm271_vm0, %v292_v19, 0.0  ;;  %v268_v33 = vmul.f32 %v264_v9, %v260_v2  ;;  %s258_s6 = scalar_lea.vmem %s944_s2, %s257_s22 }
  0x5c   : > { %v287_v21 = vadd.f32 %v286_v17, %v285_v16  ;;  %v296_v26 = vadd.f32 %v295_v24, %v294_v22  ;;  %v299_v27 = vsel %vm271_vm0, %v293_v20, 0.0  ;;  %v269_v37 = vmul.f32 %v265_v10, %v261_v3 }
  0x5d   : > { %v272_v38 = vsel %vm271_vm0, %v267_v32, 0.0  ;;  %v273_v39 = vsel %vm271_vm0, %v268_v33, 0.0  ;;  %v270_v44 = vmul.f32 %v266_v11, %v262_v4 }
  0x5e   : > { %v289_v28 = vadd.f32 %v288_v23, %v287_v21  ;;  %v298_v29 = vadd.f32 %v297_v25, %v296_v26  ;;  %v274_v43 = vadd.f32 %v273_v39, %v272_v38  ;;  %v275_v45 = vsel %vm271_vm0, %v269_v37, 0.0  ;;  %v318_v51 = vld [vmem:[#allocation2] sm:$0xff] }
  0x5f   : > { %v277_v47 = vsel %vm271_vm0, %v270_v44, 0.0 }
  0x60   : > { %v300_v30 = vadd.f32 %v299_v27, %v298_v29  ;;  %v276_v46 = vadd.f32 %v275_v45, %v274_v43 }
  0x62   : > { %v301_v31 = vmul.f32 %v300_v30, %v289_v28  ;;  %v278_v48 = vadd.f32 %v277_v47, %v276_v46 }
  0x64   : > { %552 = vrsqrt.f32 %v301_v31  ;;  %vm304_vm1 = vcmp.eq.f32.partialorder %v301_v31, inf  ;;  %v307_v35 = vand.u32 2147483648, %v301_v31  ;;  %vm306_vm2 = vcmp.eq.f32.partialorder %v301_v31, 0.0 }
  0x6e   : > { %v553_v34 = vpop.eup %552 }
  0x6f   : > { %v303_v36 = vmul.f32 %v553_v34, %v301_v31 }
  0x71   : > { %v305_v40 = vsel %vm304_vm1, %v301_v31, %v303_v36 }
  0x72   : > { %v308_v41 = vsel %vm306_vm2, %v307_v35, %v305_v40 }
  0x73   : > { %v309_v42 = vmax.f32 %v308_v41, 1e-20 }
  0x75   : > { %554 = vrcp.f32 %v309_v42 }
  0x7f   : > { %v555_v49 = vpop.eup %554 }
  0x80   : > { %v311_v50 = vmul.f32 %v555_v49, %v278_v48 }
  0x82   : > { %v312_v52 = vsub.f32 1.0, %v311_v50 }
  0x84   : > { %v319_v53 = vadd.f32 %v318_v51, %v312_v52 }
  0x86   : > { %320 = vst.msk [vmem:[#allocation2] sm:$0xff] %vm271_vm0, %v319_v53 }
  0x8d   : > { %v324_v54 = vld [vmem:[#allocation2] sm:$0xff] }
  0x8e   : > { %v325_v55 = vsel %vm271_vm0, %v324_v54, 0.0 }
  0x8f   : > { %326 = vadd.xlane.f32.xlu0 %v325_v55 }
 0x11c   : > { %v327_v56 = vpop.xlane.xlu0 %326 }
 0x11d   : > { %v328_v57 = vrot.slane %v327_v56, 4 }
 0x11f   : > { %v329_v58 = vadd.f32 %v328_v57, %v327_v56 }
 0x121   : > { %v330_v59 = vrot.slane %v329_v58, 2 }
 0x123   : > { %v331_v60 = vadd.f32 %v330_v59, %v329_v58 }
 0x125   : > { %v332_v61 = vrot.slane %v331_v60, 1 }
 0x127   : > { %v333_v62 = vadd.f32 %v332_v61, %v331_v60 }
 0x129   : > { %470 = vpush %v333_v62 }
 0x15a   : > { %s471_s8 = spop %470 }
 0x15b   : > { %v335_v63 = vstv %s471_s8 }
 0x15c   : > { %337 = vst.msk [vmem:[%s258_s6] sm:$0x1] %vm336_vm3, %v335_v63 }
 0x15d PF: > { %s18_s16 = sadd.s32 1, %s686_s16   ;;  %s952_s9 = smov %s662_s10 }
 0x15e   : > { %p15_p7 = scmp.ge.s32.totalorder %s18_s16, 6   ;;  %s953_s10 = smov %s666_s11 }
 0x15f   : > { %s954_s11 = smov %s779_s28  ;;  %s955_s12 = smov %s678_s14 }
 0x160   : > { %s956_s13 = smov %s682_s15  ;;  %s957_s14 = smov %s960_s18 }
 0x161   : > { %s958_s15 = smov %s964_s19  ;;  %17 = sbr.rel (!%p15_p7) target bundleno = 7 (0x7), region = 89 }
 0x168   :  { %363 = vsyncpa [#allocation4], 1 }
 0x169   :  { %365 = vsyncpa [#allocation4 + $0x1], 1 }
 0x16a   :  { %366 = vsyncpa [#allocation6], 1 }
 0x16b   :  { %368 = vsyncpa [#allocation6 + $0x1], 1 }

</bundles_post_ra>
